<compile_context>
chip_gen: v6e
topology: v6e:2x2x1
jax: 0.10.0
libtpu: 0.0.40
codegen_flags: <defaults>
</compile_context>

<pallas_src>
import functools

import jax
import jax.numpy as jnp
from jax import lax
from jax.experimental import pallas as pl
from jax.experimental.pallas import tpu as pltpu


def _round_up(x, m):
    return ((x + m - 1) // m) * m


def _fused_dilated_block_kernel(xp_ref, w1_ref, b1_ref, w2_ref, b2_ref,
                                mask_ref, o_ref, z_ref, *,
                                k, d1, d2, Wt, S1, S2, scale):
    """One batch element: conv(d1)+ReLU -> conv(d2)+ReLU -> *scale.

    xp_ref  : (1, Cin, XF)       zero-padded image, rows of width Wt flattened
                                 onto the lane axis (+ over-read slack, zero)
    w1_ref  : (k*k, Cmid, Cin)   per-tap conv1 weight matrices (resident)
    b1_ref  : (Cmid, 1)          f32
    w2_ref  : (k*k, Cout, Cmid)  per-tap conv2 weight matrices (resident)
    b2_ref  : (Cout, 1)          f32
    mask_ref: (1, S1)            {0,1} f32 mask of conv1's valid (non-pad) area
    o_ref   : (1, Cout, S2)      lane-dense extended output (H2 rows x Wt cols)
    z_ref   : (Cmid, ZF)         conv1->conv2 intermediate, lane-dense scratch
    """
    Cmid = w1_ref.shape[1]
    Cout = w2_ref.shape[1]
    ZF = z_ref.shape[1]

    # ---- conv1: k*k shifted (Cmid, Cin) @ (Cin, S1) MXU matmuls ------------
    # Each tap is a static lane-offset slice of the flat padded image; no
    # im2col matrix, no reshapes, f32 accumulation on the MXU result path.
    acc1 = jnp.zeros((Cmid, S1), jnp.float32)
    for ky in range(k):
        for kx in range(k):
            off = ky * d1 * Wt + kx * d1
            acc1 = acc1 + jnp.dot(w1_ref[ky * k + kx],
                                  xp_ref[0, :, off:off + S1],
                                  preferred_element_type=jnp.float32)
    y1 = jnp.maximum(acc1 + b1_ref[...].astype(jnp.float32), 0.0)
    # PyTorch zero-pads conv1's output before conv2; in the extended layout the
    # pad ring holds nonzero conv values, so zero it with the resident mask.
    y1 = y1 * mask_ref[...]

    z_ref[:, :S1] = y1.astype(z_ref.dtype)
    if ZF > S1:                      # keep the tap over-read slack finite/zero
        z_ref[:, S1:] = jnp.zeros((Cmid, ZF - S1), z_ref.dtype)

    # ---- conv2: k*k shifted matmuls straight off the lane-dense z ----------
    acc2 = jnp.zeros((Cout, S2), jnp.float32)
    for ky in range(k):
        for kx in range(k):
            off = ky * d2 * Wt + kx * d2
            acc2 = acc2 + jnp.dot(w2_ref[ky * k + kx],
                                  z_ref[:, off:off + S2],
                                  preferred_element_type=jnp.float32)
    y2 = jnp.maximum(acc2 + b2_ref[...].astype(jnp.float32), 0.0)
    if scale != 1.0:                 # module: (net(x)) * scale, post-ReLU
        y2 = y2 * scale
    o_ref[0] = y2.astype(o_ref.dtype)          # lane-dense store (Cout, H2*Wt)


def dilated_conv_block(x_nchw, params, *, dilations, kernel_size, scale=1.0,
                       compute_dtype=None):
    """Forward pass equivalent to DilatedConvBlock (batchnorm=False)."""
    N, Cin, H, W = x_nchw.shape
    k = kernel_size
    d1, d2 = dilations
    out_dtype = x_nchw.dtype
    cd = jnp.dtype(compute_dtype) if compute_dtype is not None else jnp.dtype(out_dtype)

    w1, b1, w2, b2 = params["w1"], params["b1"], params["w2"], params["b2"]
    Cmid = w1.shape[-1]
    Cout = w2.shape[-1]

    # --- geometry (general k / dilations; matches the PyTorch padding) ------
    pad1 = k // 2 + d1 - 1
    pad2 = k // 2 + d2 - 1
    P = pad1 + pad2
    H1 = H + 2 * pad1 - d1 * (k - 1)
    W1 = W + 2 * pad1 - d1 * (k - 1)
    H2 = H1 + 2 * pad2 - d2 * (k - 1)
    W2 = W1 + 2 * pad2 - d2 * (k - 1)
    assert H1 > 0 and W1 > 0 and H2 > 0 and W2 > 0
    Ht, Wt = H + 2 * P, W + 2 * P                 # single padded grid, width Wt
    Hp2, Wp2 = H1 + 2 * pad2, W1 + 2 * pad2       # conv2 input extent
    assert Hp2 == Ht - d1 * (k - 1) and Wp2 == Wt - d1 * (k - 1)

    S1 = Hp2 * Wt                    # extended conv1 output / conv2 input size
    S2 = H2 * Wt                     # extended conv2 output size
    XF = _round_up(Ht * Wt + (k - 1) * d1, 128)   # + conv1 tap over-read slack
    ZF = _round_up(S1 + (k - 1) * d2, 128)        # + conv2 tap over-read slack

    # --- one-time input prep: the ONLY padding in the whole pipeline --------
    xp = jnp.pad(x_nchw.astype(cd), ((0, 0), (0, 0), (P, P), (P, P)))
    xp = xp.reshape(N, Cin, Ht * Wt)
    xp = jnp.pad(xp, ((0, 0), (0, 0), (0, XF - Ht * Wt)))

    # Per-tap weight matrices, HWIO -> (k*k, C_out_layer, C_in_layer).
    w1t = jnp.transpose(w1, (0, 1, 3, 2)).reshape(k * k, Cmid, Cin).astype(cd)
    w2t = jnp.transpose(w2, (0, 1, 3, 2)).reshape(k * k, Cout, Cmid).astype(cd)
    b1c = b1.reshape(Cmid, 1).astype(jnp.float32)
    b2c = b2.reshape(Cout, 1).astype(jnp.float32)

    # {0,1} mask of conv1's valid region inside the extended grid (everything
    # else is PyTorch's zero padding of conv1's output / garbage columns).
    rows = jnp.arange(Hp2)[:, None]
    cols = jnp.arange(Wt)[None, :]
    mask = ((rows >= pad2) & (rows < pad2 + H1) &
            (cols >= pad2) & (cols < pad2 + W1)).astype(jnp.float32)
    mask = mask.reshape(1, S1)

    kernel = functools.partial(_fused_dilated_block_kernel,
                               k=k, d1=d1, d2=d2, Wt=Wt, S1=S1, S2=S2,
                               scale=float(scale))

    # --- VMEM budget: in/out blocks double-buffered, scratch single-buffered;
    #     generation-aware cap, no hard 32 MiB clamp. ------------------------
    csz = cd.itemsize
    osz = jnp.dtype(out_dtype).itemsize
    need = (2 * (Cin * XF * csz                    # input image block
                 + k * k * Cmid * Cin * csz + Cmid * 4   # conv1 weights + bias
                 + k * k * Cout * Cmid * csz + Cout * 4  # conv2 weights + bias
                 + S1 * 4                          # mask
                 + Cout * S2 * osz)                # output block
            + Cmid * ZF * csz)                     # z scratch (single)
    try:
        cap = int(pltpu.get_tpu_info().vmem_capacity_bytes * 3 // 4)
    except Exception:  # conservative fallback (safe on every TPU generation)
        cap = 48 << 20
    vmem_limit = int(min(cap, max(need + (4 << 20), 16 << 20)))

    out_ext = pl.pallas_call(
        kernel,
        out_shape=jax.ShapeDtypeStruct((N, Cout, S2), out_dtype),
        grid_spec=pltpu.PrefetchScalarGridSpec(
            num_scalar_prefetch=0,
            grid=(N,),
            in_specs=[
                pl.BlockSpec((1, Cin, XF), lambda n: (n, 0, 0)),
                pl.BlockSpec((k * k, Cmid, Cin), lambda n: (0, 0, 0)),
                pl.BlockSpec((Cmid, 1), lambda n: (0, 0)),
                pl.BlockSpec((k * k, Cout, Cmid), lambda n: (0, 0, 0)),
                pl.BlockSpec((Cout, 1), lambda n: (0, 0)),
                pl.BlockSpec((1, S1), lambda n: (0, 0)),
            ],
            out_specs=pl.BlockSpec((1, Cout, S2), lambda n: (n, 0, 0)),
            scratch_shapes=[pltpu.VMEM((Cmid, ZF), cd)],
        ),
        compiler_params=pltpu.CompilerParams(
            dimension_semantics=("parallel",),
            vmem_limit_bytes=vmem_limit),
    )(xp, w1t, b1c, w2t, b2c, mask)

    # Cheap wrapper-side extraction: drop the extended rows' garbage columns.
    out = out_ext.reshape(N, Cout, H2, Wt)[:, :, :, :W2]
    return out


def _reference(x_nchw, params, *, dilations, kernel_size, scale):
    """Pure-JAX reference using lax.conv_general_dilated (NCHW / HWIO)."""
    k = kernel_size
    y = x_nchw
    for w, b, d in ((params["w1"], params["b1"], dilations[0]),
                    (params["w2"], params["b2"], dilations[1])):
        pad = k // 2 + d - 1
        y = lax.conv_general_dilated(
            y, w, window_strides=(1, 1), padding=((pad, pad), (pad, pad)),
            rhs_dilation=(d, d),
            dimension_numbers=("NCHW", "HWIO", "NCHW"))
        y = jnp.maximum(y + b.reshape(1, -1, 1, 1), 0.0)
    return y * scale


if __name__ == "__main__":
    # Small shapes consistent with the module's forward (N, C, H, W).
    N, C, H, W = 2, 4, 16, 16
    kernel_size = 3
    dilations = (2, 1)
    out_channels = C          # module default: out_channels=None -> in_channels
    scale = 0.5

    key = jax.random.PRNGKey(0)
    kx, kw1, kb1, kw2, kb2 = jax.random.split(key, 5)

    x = jax.random.normal(kx, (N, C, H, W), dtype=jnp.float32)

    # Deterministic parameter init (HWIO layout), roughly Conv2d-default scale.
    fan_in = C * kernel_size * kernel_size
    bound = 1.0 / (fan_in ** 0.5)
    params = {
        "w1": jax.random.uniform(kw1, (kernel_size, kernel_size, C, C),
                                 jnp.float32, -bound, bound),
        "b1": jax.random.uniform(kb1, (C,), jnp.float32, -bound, bound),
        "w2": jax.random.uniform(kw2, (kernel_size, kernel_size, C,
                                       out_channels),
                                 jnp.float32, -bound, bound),
        "b2": jax.random.uniform(kb2, (out_channels,), jnp.float32,
                                 -bound, bound),
    }

    out = dilated_conv_block(x, params, dilations=dilations,
                             kernel_size=kernel_size, scale=scale)
    out = jax.block_until_ready(out)

    ref = _reference(x, params, dilations=dilations,
                     kernel_size=kernel_size, scale=scale)
    assert out.shape == (N, out_channels, H, W)
    assert jnp.allclose(out, ref, atol=1e-4, rtol=1e-4)

    print("KERNEL_OK")
</pallas_src>

<mosaic_0001>
module attributes {stable_mosaic.version = 11 : i64} {
  func.func @_fused_dilated_block_kernel(%arg0: i32, %arg1: memref<1x4x512xf32, #tpu.memory_space<vmem>>, %arg2: memref<9x4x4xf32, #tpu.memory_space<vmem>>, %arg3: memref<4x1xf32, #tpu.memory_space<vmem>>, %arg4: memref<9x4x4xf32, #tpu.memory_space<vmem>>, %arg5: memref<4x1xf32, #tpu.memory_space<vmem>>, %arg6: memref<1x396xf32, #tpu.memory_space<vmem>>, %arg7: memref<1x4x352xf32, #tpu.memory_space<vmem>>, %arg8: memref<4x512xf32, #tpu.memory_space<vmem>>) attributes {dimension_semantics = [#tpu.dimension_semantics<parallel>], iteration_bounds = array<i64: 2>, scalar_prefetch = 0 : i64, scratch_operands = 1 : i64, tpu.core_type = #tpu.core_type<tc>, window_params = [{transform_indices = @transform_0, window_bounds = array<i64: 1, 4, 512>}, {pipeline_mode = #tpu.pipeline_mode<synchronous>, transform_indices = @transform_1, window_bounds = array<i64: 9, 4, 4>}, {pipeline_mode = #tpu.pipeline_mode<synchronous>, transform_indices = @transform_2, window_bounds = array<i64: 4, 1>}, {pipeline_mode = #tpu.pipeline_mode<synchronous>, transform_indices = @transform_3, window_bounds = array<i64: 9, 4, 4>}, {pipeline_mode = #tpu.pipeline_mode<synchronous>, transform_indices = @transform_4, window_bounds = array<i64: 4, 1>}, {pipeline_mode = #tpu.pipeline_mode<synchronous>, transform_indices = @transform_5, window_bounds = array<i64: 1, 396>}, {transform_indices = @transform_6, window_bounds = array<i64: 1, 4, 352>}]} {
    %cst = arith.constant 0.000000e+00 : f32
    %0 = vector.broadcast %cst : f32 to vector<4x396xf32>
    %c0 = arith.constant 0 : index
    %c0_0 = arith.constant 0 : index
    %c0_1 = arith.constant 0 : index
    %1 = vector.load %arg2[%c0, %c0_0, %c0_1] : memref<9x4x4xf32, #tpu.memory_space<vmem>>, vector<1x4x4xf32>
    %2 = vector.shape_cast %1 : vector<1x4x4xf32> to vector<4x4xf32>
    %c0_2 = arith.constant 0 : index
    %c0_3 = arith.constant 0 : index
    %c0_4 = arith.constant 0 : index
    %3 = vector.load %arg1[%c0_2, %c0_3, %c0_4] : memref<1x4x512xf32, #tpu.memory_space<vmem>>, vector<1x4x396xf32>
    %4 = vector.shape_cast %3 : vector<1x4x396xf32> to vector<4x396xf32>
    %cst_5 = arith.constant dense<0.000000e+00> : vector<4x396xf32>
    %5 = tpu.matmul %2, %4, %cst_5 {dimension_numbers = #tpu.dot_dimension_numbers<[1], [0], [0], [1], [0, 0, 1, 1], [], []>} : vector<4x4xf32>, vector<4x396xf32>, vector<4x396xf32> -> vector<4x396xf32>
    %6 = arith.addf %0, %5 : vector<4x396xf32>
    %c1 = arith.constant 1 : index
    %c0_6 = arith.constant 0 : index
    %c0_7 = arith.constant 0 : index
    %7 = vector.load %arg2[%c1, %c0_6, %c0_7] : memref<9x4x4xf32, #tpu.memory_space<vmem>>, vector<1x4x4xf32>
    %8 = vector.shape_cast %7 : vector<1x4x4xf32> to vector<4x4xf32>
    %c0_8 = arith.constant 0 : index
    %c0_9 = arith.constant 0 : index
    %c2 = arith.constant 2 : index
    %9 = vector.load %arg1[%c0_8, %c0_9, %c2] : memref<1x4x512xf32, #tpu.memory_space<vmem>>, vector<1x4x396xf32>
    %10 = vector.shape_cast %9 : vector<1x4x396xf32> to vector<4x396xf32>
    %cst_10 = arith.constant dense<0.000000e+00> : vector<4x396xf32>
    %11 = tpu.matmul %8, %10, %cst_10 {dimension_numbers = #tpu.dot_dimension_numbers<[1], [0], [0], [1], [0, 0, 1, 1], [], []>} : vector<4x4xf32>, vector<4x396xf32>, vector<4x396xf32> -> vector<4x396xf32>
    %12 = arith.addf %6, %11 : vector<4x396xf32>
    %c2_11 = arith.constant 2 : index
    %c0_12 = arith.constant 0 : index
    %c0_13 = arith.constant 0 : index
    %13 = vector.load %arg2[%c2_11, %c0_12, %c0_13] : memref<9x4x4xf32, #tpu.memory_space<vmem>>, vector<1x4x4xf32>
    %14 = vector.shape_cast %13 : vector<1x4x4xf32> to vector<4x4xf32>
    %c0_14 = arith.constant 0 : index
    %c0_15 = arith.constant 0 : index
    %c4 = arith.constant 4 : index
    %15 = vector.load %arg1[%c0_14, %c0_15, %c4] : memref<1x4x512xf32, #tpu.memory_space<vmem>>, vector<1x4x396xf32>
    %16 = vector.shape_cast %15 : vector<1x4x396xf32> to vector<4x396xf32>
    %cst_16 = arith.constant dense<0.000000e+00> : vector<4x396xf32>
    %17 = tpu.matmul %14, %16, %cst_16 {dimension_numbers = #tpu.dot_dimension_numbers<[1], [0], [0], [1], [0, 0, 1, 1], [], []>} : vector<4x4xf32>, vector<4x396xf32>, vector<4x396xf32> -> vector<4x396xf32>
    %18 = arith.addf %12, %17 : vector<4x396xf32>
    %c3 = arith.constant 3 : index
    %c0_17 = arith.constant 0 : index
    %c0_18 = arith.constant 0 : index
    %19 = vector.load %arg2[%c3, %c0_17, %c0_18] : memref<9x4x4xf32, #tpu.memory_space<vmem>>, vector<1x4x4xf32>
    %20 = vector.shape_cast %19 : vector<1x4x4xf32> to vector<4x4xf32>
    %c0_19 = arith.constant 0 : index
    %c0_20 = arith.constant 0 : index
    %c44 = arith.constant 44 : index
    %21 = vector.load %arg1[%c0_19, %c0_20, %c44] : memref<1x4x512xf32, #tpu.memory_space<vmem>>, vector<1x4x396xf32>
    %22 = vector.shape_cast %21 : vector<1x4x396xf32> to vector<4x396xf32>
    %cst_21 = arith.constant dense<0.000000e+00> : vector<4x396xf32>
    %23 = tpu.matmul %20, %22, %cst_21 {dimension_numbers = #tpu.dot_dimension_numbers<[1], [0], [0], [1], [0, 0, 1, 1], [], []>} : vector<4x4xf32>, vector<4x396xf32>, vector<4x396xf32> -> vector<4x396xf32>
    %24 = arith.addf %18, %23 : vector<4x396xf32>
    %c4_22 = arith.constant 4 : index
    %c0_23 = arith.constant 0 : index
    %c0_24 = arith.constant 0 : index
    %25 = vector.load %arg2[%c4_22, %c0_23, %c0_24] : memref<9x4x4xf32, #tpu.memory_space<vmem>>, vector<1x4x4xf32>
    %26 = vector.shape_cast %25 : vector<1x4x4xf32> to vector<4x4xf32>
    %c0_25 = arith.constant 0 : index
    %c0_26 = arith.constant 0 : index
    %c46 = arith.constant 46 : index
    %27 = vector.load %arg1[%c0_25, %c0_26, %c46] : memref<1x4x512xf32, #tpu.memory_space<vmem>>, vector<1x4x396xf32>
    %28 = vector.shape_cast %27 : vector<1x4x396xf32> to vector<4x396xf32>
    %cst_27 = arith.constant dense<0.000000e+00> : vector<4x396xf32>
    %29 = tpu.matmul %26, %28, %cst_27 {dimension_numbers = #tpu.dot_dimension_numbers<[1], [0], [0], [1], [0, 0, 1, 1], [], []>} : vector<4x4xf32>, vector<4x396xf32>, vector<4x396xf32> -> vector<4x396xf32>
    %30 = arith.addf %24, %29 : vector<4x396xf32>
    %c5 = arith.constant 5 : index
    %c0_28 = arith.constant 0 : index
    %c0_29 = arith.constant 0 : index
    %31 = vector.load %arg2[%c5, %c0_28, %c0_29] : memref<9x4x4xf32, #tpu.memory_space<vmem>>, vector<1x4x4xf32>
    %32 = vector.shape_cast %31 : vector<1x4x4xf32> to vector<4x4xf32>
    %c0_30 = arith.constant 0 : index
    %c0_31 = arith.constant 0 : index
    %c48 = arith.constant 48 : index
    %33 = vector.load %arg1[%c0_30, %c0_31, %c48] : memref<1x4x512xf32, #tpu.memory_space<vmem>>, vector<1x4x396xf32>
    %34 = vector.shape_cast %33 : vector<1x4x396xf32> to vector<4x396xf32>
    %cst_32 = arith.constant dense<0.000000e+00> : vector<4x396xf32>
    %35 = tpu.matmul %32, %34, %cst_32 {dimension_numbers = #tpu.dot_dimension_numbers<[1], [0], [0], [1], [0, 0, 1, 1], [], []>} : vector<4x4xf32>, vector<4x396xf32>, vector<4x396xf32> -> vector<4x396xf32>
    %36 = arith.addf %30, %35 : vector<4x396xf32>
    %c6 = arith.constant 6 : index
    %c0_33 = arith.constant 0 : index
    %c0_34 = arith.constant 0 : index
    %37 = vector.load %arg2[%c6, %c0_33, %c0_34] : memref<9x4x4xf32, #tpu.memory_space<vmem>>, vector<1x4x4xf32>
    %38 = vector.shape_cast %37 : vector<1x4x4xf32> to vector<4x4xf32>
    %c0_35 = arith.constant 0 : index
    %c0_36 = arith.constant 0 : index
    %c88 = arith.constant 88 : index
    %39 = vector.load %arg1[%c0_35, %c0_36, %c88] : memref<1x4x512xf32, #tpu.memory_space<vmem>>, vector<1x4x396xf32>
    %40 = vector.shape_cast %39 : vector<1x4x396xf32> to vector<4x396xf32>
    %cst_37 = arith.constant dense<0.000000e+00> : vector<4x396xf32>
    %41 = tpu.matmul %38, %40, %cst_37 {dimension_numbers = #tpu.dot_dimension_numbers<[1], [0], [0], [1], [0, 0, 1, 1], [], []>} : vector<4x4xf32>, vector<4x396xf32>, vector<4x396xf32> -> vector<4x396xf32>
    %42 = arith.addf %36, %41 : vector<4x396xf32>
    %c7 = arith.constant 7 : index
    %c0_38 = arith.constant 0 : index
    %c0_39 = arith.constant 0 : index
    %43 = vector.load %arg2[%c7, %c0_38, %c0_39] : memref<9x4x4xf32, #tpu.memory_space<vmem>>, vector<1x4x4xf32>
    %44 = vector.shape_cast %43 : vector<1x4x4xf32> to vector<4x4xf32>
    %c0_40 = arith.constant 0 : index
    %c0_41 = arith.constant 0 : index
    %c90 = arith.constant 90 : index
    %45 = vector.load %arg1[%c0_40, %c0_41, %c90] : memref<1x4x512xf32, #tpu.memory_space<vmem>>, vector<1x4x396xf32>
    %46 = vector.shape_cast %45 : vector<1x4x396xf32> to vector<4x396xf32>
    %cst_42 = arith.constant dense<0.000000e+00> : vector<4x396xf32>
    %47 = tpu.matmul %44, %46, %cst_42 {dimension_numbers = #tpu.dot_dimension_numbers<[1], [0], [0], [1], [0, 0, 1, 1], [], []>} : vector<4x4xf32>, vector<4x396xf32>, vector<4x396xf32> -> vector<4x396xf32>
    %48 = arith.addf %42, %47 : vector<4x396xf32>
    %c8 = arith.constant 8 : index
    %c0_43 = arith.constant 0 : index
    %c0_44 = arith.constant 0 : index
    %49 = vector.load %arg2[%c8, %c0_43, %c0_44] : memref<9x4x4xf32, #tpu.memory_space<vmem>>, vector<1x4x4xf32>
    %50 = vector.shape_cast %49 : vector<1x4x4xf32> to vector<4x4xf32>
    %c0_45 = arith.constant 0 : index
    %c0_46 = arith.constant 0 : index
    %c92 = arith.constant 92 : index
    %51 = vector.load %arg1[%c0_45, %c0_46, %c92] : memref<1x4x512xf32, #tpu.memory_space<vmem>>, vector<1x4x396xf32>
    %52 = vector.shape_cast %51 : vector<1x4x396xf32> to vector<4x396xf32>
    %cst_47 = arith.constant dense<0.000000e+00> : vector<4x396xf32>
    %53 = tpu.matmul %50, %52, %cst_47 {dimension_numbers = #tpu.dot_dimension_numbers<[1], [0], [0], [1], [0, 0, 1, 1], [], []>} : vector<4x4xf32>, vector<4x396xf32>, vector<4x396xf32> -> vector<4x396xf32>
    %54 = arith.addf %48, %53 : vector<4x396xf32>
    %c0_48 = arith.constant 0 : index
    %c0_49 = arith.constant 0 : index
    %55 = vector.load %arg3[%c0_48, %c0_49] : memref<4x1xf32, #tpu.memory_space<vmem>>, vector<4x1xf32>
    %56 = vector.broadcast %55 : vector<4x1xf32> to vector<4x396xf32>
    %57 = arith.addf %54, %56 : vector<4x396xf32>
    %cst_50 = arith.constant 0.000000e+00 : f32
    %58 = vector.broadcast %cst_50 : f32 to vector<4x396xf32>
    %59 = arith.maximumf %57, %58 : vector<4x396xf32>
    %c0_51 = arith.constant 0 : index
    %c0_52 = arith.constant 0 : index
    %60 = vector.load %arg6[%c0_51, %c0_52] : memref<1x396xf32, #tpu.memory_space<vmem>>, vector<1x396xf32>
    %61 = vector.broadcast %60 : vector<1x396xf32> to vector<4x396xf32>
    %62 = arith.mulf %59, %61 : vector<4x396xf32>
    %c0_53 = arith.constant 0 : index
    %c0_54 = arith.constant 0 : index
    %63 = vector.load %arg8[%c0_53, %c0_54] : memref<4x512xf32, #tpu.memory_space<vmem>>, vector<4x396xf32>
    tpu.vector_store %arg8[%c0_53, %c0_54], %62 {strides = array<i32>} : memref<4x512xf32, #tpu.memory_space<vmem>>, vector<4x396xf32>,
    %cst_55 = arith.constant 0.000000e+00 : f32
    %64 = vector.broadcast %cst_55 : f32 to vector<4x116xf32>
    %c0_56 = arith.constant 0 : index
    %c396 = arith.constant 396 : index
    %65 = vector.load %arg8[%c0_56, %c396] : memref<4x512xf32, #tpu.memory_space<vmem>>, vector<4x116xf32>
    tpu.vector_store %arg8[%c0_56, %c396], %64 {strides = array<i32>} : memref<4x512xf32, #tpu.memory_space<vmem>>, vector<4x116xf32>,
    %cst_57 = arith.constant 0.000000e+00 : f32
    %66 = vector.broadcast %cst_57 : f32 to vector<4x352xf32>
    %c0_58 = arith.constant 0 : index
    %c0_59 = arith.constant 0 : index
    %c0_60 = arith.constant 0 : index
    %67 = vector.load %arg4[%c0_58, %c0_59, %c0_60] : memref<9x4x4xf32, #tpu.memory_space<vmem>>, vector<1x4x4xf32>
    %68 = vector.shape_cast %67 : vector<1x4x4xf32> to vector<4x4xf32>
    %c0_61 = arith.constant 0 : index
    %c0_62 = arith.constant 0 : index
    %69 = vector.load %arg8[%c0_61, %c0_62] : memref<4x512xf32, #tpu.memory_space<vmem>>, vector<4x352xf32>
    %cst_63 = arith.constant dense<0.000000e+00> : vector<4x352xf32>
    %70 = tpu.matmul %68, %69, %cst_63 {dimension_numbers = #tpu.dot_dimension_numbers<[1], [0], [0], [1], [0, 0, 1, 1], [], []>} : vector<4x4xf32>, vector<4x352xf32>, vector<4x352xf32> -> vector<4x352xf32>
    %71 = arith.addf %66, %70 : vector<4x352xf32>
    %c1_64 = arith.constant 1 : index
    %c0_65 = arith.constant 0 : index
    %c0_66 = arith.constant 0 : index
    %72 = vector.load %arg4[%c1_64, %c0_65, %c0_66] : memref<9x4x4xf32, #tpu.memory_space<vmem>>, vector<1x4x4xf32>
    %73 = vector.shape_cast %72 : vector<1x4x4xf32> to vector<4x4xf32>
    %c0_67 = arith.constant 0 : index
    %c1_68 = arith.constant 1 : index
    %74 = vector.load %arg8[%c0_67, %c1_68] : memref<4x512xf32, #tpu.memory_space<vmem>>, vector<4x352xf32>
    %cst_69 = arith.constant dense<0.000000e+00> : vector<4x352xf32>
    %75 = tpu.matmul %73, %74, %cst_69 {dimension_numbers = #tpu.dot_dimension_numbers<[1], [0], [0], [1], [0, 0, 1, 1], [], []>} : vector<4x4xf32>, vector<4x352xf32>, vector<4x352xf32> -> vector<4x352xf32>
    %76 = arith.addf %71, %75 : vector<4x352xf32>
    %c2_70 = arith.constant 2 : index
    %c0_71 = arith.constant 0 : index
    %c0_72 = arith.constant 0 : index
    %77 = vector.load %arg4[%c2_70, %c0_71, %c0_72] : memref<9x4x4xf32, #tpu.memory_space<vmem>>, vector<1x4x4xf32>
    %78 = vector.shape_cast %77 : vector<1x4x4xf32> to vector<4x4xf32>
    %c0_73 = arith.constant 0 : index
    %c2_74 = arith.constant 2 : index
    %79 = vector.load %arg8[%c0_73, %c2_74] : memref<4x512xf32, #tpu.memory_space<vmem>>, vector<4x352xf32>
    %cst_75 = arith.constant dense<0.000000e+00> : vector<4x352xf32>
    %80 = tpu.matmul %78, %79, %cst_75 {dimension_numbers = #tpu.dot_dimension_numbers<[1], [0], [0], [1], [0, 0, 1, 1], [], []>} : vector<4x4xf32>, vector<4x352xf32>, vector<4x352xf32> -> vector<4x352xf32>
    %81 = arith.addf %76, %80 : vector<4x352xf32>
    %c3_76 = arith.constant 3 : index
    %c0_77 = arith.constant 0 : index
    %c0_78 = arith.constant 0 : index
    %82 = vector.load %arg4[%c3_76, %c0_77, %c0_78] : memref<9x4x4xf32, #tpu.memory_space<vmem>>, vector<1x4x4xf32>
    %83 = vector.shape_cast %82 : vector<1x4x4xf32> to vector<4x4xf32>
    %c0_79 = arith.constant 0 : index
    %c22 = arith.constant 22 : index
    %84 = vector.load %arg8[%c0_79, %c22] : memref<4x512xf32, #tpu.memory_space<vmem>>, vector<4x352xf32>
    %cst_80 = arith.constant dense<0.000000e+00> : vector<4x352xf32>
    %85 = tpu.matmul %83, %84, %cst_80 {dimension_numbers = #tpu.dot_dimension_numbers<[1], [0], [0], [1], [0, 0, 1, 1], [], []>} : vector<4x4xf32>, vector<4x352xf32>, vector<4x352xf32> -> vector<4x352xf32>
    %86 = arith.addf %81, %85 : vector<4x352xf32>
    %c4_81 = arith.constant 4 : index
    %c0_82 = arith.constant 0 : index
    %c0_83 = arith.constant 0 : index
    %87 = vector.load %arg4[%c4_81, %c0_82, %c0_83] : memref<9x4x4xf32, #tpu.memory_space<vmem>>, vector<1x4x4xf32>
    %88 = vector.shape_cast %87 : vector<1x4x4xf32> to vector<4x4xf32>
    %c0_84 = arith.constant 0 : index
    %c23 = arith.constant 23 : index
    %89 = vector.load %arg8[%c0_84, %c23] : memref<4x512xf32, #tpu.memory_space<vmem>>, vector<4x352xf32>
    %cst_85 = arith.constant dense<0.000000e+00> : vector<4x352xf32>
    %90 = tpu.matmul %88, %89, %cst_85 {dimension_numbers = #tpu.dot_dimension_numbers<[1], [0], [0], [1], [0, 0, 1, 1], [], []>} : vector<4x4xf32>, vector<4x352xf32>, vector<4x352xf32> -> vector<4x352xf32>
    %91 = arith.addf %86, %90 : vector<4x352xf32>
    %c5_86 = arith.constant 5 : index
    %c0_87 = arith.constant 0 : index
    %c0_88 = arith.constant 0 : index
    %92 = vector.load %arg4[%c5_86, %c0_87, %c0_88] : memref<9x4x4xf32, #tpu.memory_space<vmem>>, vector<1x4x4xf32>
    %93 = vector.shape_cast %92 : vector<1x4x4xf32> to vector<4x4xf32>
    %c0_89 = arith.constant 0 : index
    %c24 = arith.constant 24 : index
    %94 = vector.load %arg8[%c0_89, %c24] : memref<4x512xf32, #tpu.memory_space<vmem>>, vector<4x352xf32>
    %cst_90 = arith.constant dense<0.000000e+00> : vector<4x352xf32>
    %95 = tpu.matmul %93, %94, %cst_90 {dimension_numbers = #tpu.dot_dimension_numbers<[1], [0], [0], [1], [0, 0, 1, 1], [], []>} : vector<4x4xf32>, vector<4x352xf32>, vector<4x352xf32> -> vector<4x352xf32>
    %96 = arith.addf %91, %95 : vector<4x352xf32>
    %c6_91 = arith.constant 6 : index
    %c0_92 = arith.constant 0 : index
    %c0_93 = arith.constant 0 : index
    %97 = vector.load %arg4[%c6_91, %c0_92, %c0_93] : memref<9x4x4xf32, #tpu.memory_space<vmem>>, vector<1x4x4xf32>
    %98 = vector.shape_cast %97 : vector<1x4x4xf32> to vector<4x4xf32>
    %c0_94 = arith.constant 0 : index
    %c44_95 = arith.constant 44 : index
    %99 = vector.load %arg8[%c0_94, %c44_95] : memref<4x512xf32, #tpu.memory_space<vmem>>, vector<4x352xf32>
    %cst_96 = arith.constant dense<0.000000e+00> : vector<4x352xf32>
    %100 = tpu.matmul %98, %99, %cst_96 {dimension_numbers = #tpu.dot_dimension_numbers<[1], [0], [0], [1], [0, 0, 1, 1], [], []>} : vector<4x4xf32>, vector<4x352xf32>, vector<4x352xf32> -> vector<4x352xf32>
    %101 = arith.addf %96, %100 : vector<4x352xf32>
    %c7_97 = arith.constant 7 : index
    %c0_98 = arith.constant 0 : index
    %c0_99 = arith.constant 0 : index
    %102 = vector.load %arg4[%c7_97, %c0_98, %c0_99] : memref<9x4x4xf32, #tpu.memory_space<vmem>>, vector<1x4x4xf32>
    %103 = vector.shape_cast %102 : vector<1x4x4xf32> to vector<4x4xf32>
    %c0_100 = arith.constant 0 : index
    %c45 = arith.constant 45 : index
    %104 = vector.load %arg8[%c0_100, %c45] : memref<4x512xf32, #tpu.memory_space<vmem>>, vector<4x352xf32>
    %cst_101 = arith.constant dense<0.000000e+00> : vector<4x352xf32>
    %105 = tpu.matmul %103, %104, %cst_101 {dimension_numbers = #tpu.dot_dimension_numbers<[1], [0], [0], [1], [0, 0, 1, 1], [], []>} : vector<4x4xf32>, vector<4x352xf32>, vector<4x352xf32> -> vector<4x352xf32>
    %106 = arith.addf %101, %105 : vector<4x352xf32>
    %c8_102 = arith.constant 8 : index
    %c0_103 = arith.constant 0 : index
    %c0_104 = arith.constant 0 : index
    %107 = vector.load %arg4[%c8_102, %c0_103, %c0_104] : memref<9x4x4xf32, #tpu.memory_space<vmem>>, vector<1x4x4xf32>
    %108 = vector.shape_cast %107 : vector<1x4x4xf32> to vector<4x4xf32>
    %c0_105 = arith.constant 0 : index
    %c46_106 = arith.constant 46 : index
    %109 = vector.load %arg8[%c0_105, %c46_106] : memref<4x512xf32, #tpu.memory_space<vmem>>, vector<4x352xf32>
    %cst_107 = arith.constant dense<0.000000e+00> : vector<4x352xf32>
    %110 = tpu.matmul %108, %109, %cst_107 {dimension_numbers = #tpu.dot_dimension_numbers<[1], [0], [0], [1], [0, 0, 1, 1], [], []>} : vector<4x4xf32>, vector<4x352xf32>, vector<4x352xf32> -> vector<4x352xf32>
    %111 = arith.addf %106, %110 : vector<4x352xf32>
    %c0_108 = arith.constant 0 : index
    %c0_109 = arith.constant 0 : index
    %112 = vector.load %arg5[%c0_108, %c0_109] : memref<4x1xf32, #tpu.memory_space<vmem>>, vector<4x1xf32>
    %113 = vector.broadcast %112 : vector<4x1xf32> to vector<4x352xf32>
    %114 = arith.addf %111, %113 : vector<4x352xf32>
    %cst_110 = arith.constant 0.000000e+00 : f32
    %115 = vector.broadcast %cst_110 : f32 to vector<4x352xf32>
    %116 = arith.maximumf %114, %115 : vector<4x352xf32>
    %cst_111 = arith.constant 5.000000e-01 : f32
    %117 = vector.broadcast %cst_111 : f32 to vector<4x352xf32>
    %118 = arith.mulf %116, %117 : vector<4x352xf32>
    %c0_112 = arith.constant 0 : index
    %c0_113 = arith.constant 0 : index
    %c0_114 = arith.constant 0 : index
    %119 = vector.load %arg7[%c0_112, %c0_113, %c0_114] : memref<1x4x352xf32, #tpu.memory_space<vmem>>, vector<1x4x352xf32>
    %120 = vector.shape_cast %119 : vector<1x4x352xf32> to vector<4x352xf32>
    %121 = vector.shape_cast %118 : vector<4x352xf32> to vector<1x4x352xf32>
    tpu.vector_store %arg7[%c0_112, %c0_113, %c0_114], %121 {strides = array<i32>} : memref<1x4x352xf32, #tpu.memory_space<vmem>>, vector<1x4x352xf32>,
    return
  }
  func.func @transform_0(%arg0: i32) -> (i32, i32, i32) {
    %c0_i32 = arith.constant 0 : i32
    %c0_i32_0 = arith.constant 0 : i32
    %c0_i32_1 = arith.constant 0 : i32
    return %arg0, %c0_i32, %c0_i32_0 : i32, i32, i32
  }
  func.func @transform_1(%arg0: i32) -> (i32, i32, i32) {
    %c0_i32 = arith.constant 0 : i32
    %c0_i32_0 = arith.constant 0 : i32
    %c0_i32_1 = arith.constant 0 : i32
    %c0_i32_2 = arith.constant 0 : i32
    return %c0_i32, %c0_i32_0, %c0_i32_1 : i32, i32, i32
  }
  func.func @transform_2(%arg0: i32) -> (i32, i32) {
    %c0_i32 = arith.constant 0 : i32
    %c0_i32_0 = arith.constant 0 : i32
    %c0_i32_1 = arith.constant 0 : i32
    return %c0_i32, %c0_i32_0 : i32, i32
  }
  func.func @transform_3(%arg0: i32) -> (i32, i32, i32) {
    %c0_i32 = arith.constant 0 : i32
    %c0_i32_0 = arith.constant 0 : i32
    %c0_i32_1 = arith.constant 0 : i32
    %c0_i32_2 = arith.constant 0 : i32
    return %c0_i32, %c0_i32_0, %c0_i32_1 : i32, i32, i32
  }
  func.func @transform_4(%arg0: i32) -> (i32, i32) {
    %c0_i32 = arith.constant 0 : i32
    %c0_i32_0 = arith.constant 0 : i32
    %c0_i32_1 = arith.constant 0 : i32
    return %c0_i32, %c0_i32_0 : i32, i32
  }
  func.func @transform_5(%arg0: i32) -> (i32, i32) {
    %c0_i32 = arith.constant 0 : i32
    %c0_i32_0 = arith.constant 0 : i32
    %c0_i32_1 = arith.constant 0 : i32
    return %c0_i32, %c0_i32_0 : i32, i32
  }
  func.func @transform_6(%arg0: i32) -> (i32, i32, i32) {
    %c0_i32 = arith.constant 0 : i32
    %c0_i32_0 = arith.constant 0 : i32
    %c0_i32_1 = arith.constant 0 : i32
    return %arg0, %c0_i32, %c0_i32_0 : i32, i32, i32
  }
}

</mosaic_0001>

<bundles_post_ra>
// kernel: tpu_custom_call.1
= control target key start
LH: loop header
LB: loop body
LE: loop exit
PB: predicated region body
PF: predicated region fallthrough
CT: control target
= control target key end

     0   :  { %11 = vsyncpa [#allocation4], 0  ;;  %s4260_s0 = inlined_call_operand.vmem [shape: f32[2,4,512], index: 0, kind: input, shape index: {}]   ;;  %s4261_s1 = inlined_call_operand.vmem [shape: f32[9,4,4], index: 1, kind: input, shape index: {}]   ;;  %s4262_s2 = inlined_call_operand.vmem [shape: f32[4,1], index: 2, kind: input, shape index: {}]   ;;  %s4263_s3 = inlined_call_operand.vmem [shape: f32[9,4,4], index: 3, kind: input, shape index: {}]   ;;  %s4264_s4 = inlined_call_operand.vmem [shape: f32[4,1], index: 4, kind: input, shape index: {}]   ;;  %s4265_s5 = inlined_call_operand.vmem [shape: f32[1,396], index: 5, kind: input, shape index: {}]   ;;  %s4266_s6 = inlined_call_operand.hbm [shape: f32[2,4,352], index: 6, kind: output, shape index: {}]  }
   0x1   :  { %13 = vsyncpa [#allocation4 + $0x1], 0  ;;  %s3842_s21 = smov 0   ;;  %s3844_s22 = smov 0  }
   0x2   :  { %s3846_s23 = smov 0   ;;  %s3848_s24 = smov 0  }
   0x3 LB: > { %s3863_s25 = sadd.s32 4294967295, %s3788_s24   ;;  %s3477_s26 = sadd.s32 4294967294, %s3788_s24   ;;  %s3788_s24 = sphi %s3848_s24, %s4272_s24   ;;  %s3784_s23 = sphi %s3846_s23, %s4271_s23   ;;  %s3780_s22 = sphi %s3844_s22, %s4270_s22   ;;  %s3776_s21 = sphi %s3842_s21, %s4269_s21  }
   0x4   : > { %s3867_s27 = sadd.s32 1, %s3788_s24   ;;  %s157_s28 = sadd.s32 1, %s3784_s23 }
   0x5   : > { %s154_s29 = ssub.s32 %s3788_s24, %s3867_s27  ;;  %p167_p0 = scmp.ne.s32.totalorder %s3784_s23, %s3780_s22 }
   0x6   : > { %p155_p1 = scmp.eq.s32.totalorder %s154_s29, 0  ;;  %p168_p2 = scmp.eq.s32.totalorder %s3863_s25, 1 }
   0x7   : > { %p173_p3 = scmp.ne.s32.totalorder %s3780_s22, %s3776_s21  ;;  %p174_p4 = scmp.eq.s32.totalorder %s3477_s26, 1 }
   0x8   : > { %s3878_s30 = scalar_select %p155_p1, %s3784_s23, %s157_s28  }
   0x9   : > { %p3880_p5 = por %p168_p2, %p167_p0  ;;  %p3884_p6 = por %p174_p4, %p173_p3 }
   0xa   : > { %p3480_p7 = scmp.ge.s32.totalorder %s3788_s24, 1  ;;  %p215_p8 = scmp.lt.s32.totalorder %s3788_s24, 3 }
   0xc   : > { %p216_p9 = pnand %p3480_p7, %p215_p8 }
   0xd   : > { %p245_p10 = scmp.lt.s32.totalorder (!%p216_p9), %s3863_s25, 1  ;;  %s3791_s14 = smov (!%p216_p9), 126  }
   0xe   : > { %219 = sbr.rel (%p216_p9) target bundleno = 802 (0x322), region = 44  ;;  %s3792_s15 = smov (!%p216_p9), 124  }
   0xf   : > { %s3793_s16 = smov (!%p216_p9), 84   ;;  %s3794_s17 = smov (!%p216_p9), 82  }
  0x10   : > { %s3795_s18 = smov (!%p216_p9), 80   ;;  %s3796_s19 = smov (!%p216_p9), 40  }
  0x11   : > { %s3797_s20 = smov (!%p216_p9), 38   ;;  %s3799_s26 = smov (!%p216_p9), 36  }
  0x12   : > { %s3803_s28 = smov (!%p216_p9), 106   ;;  %s3804_s29 = smov (!%p216_p9), 104  }
  0x13   : > { %v3790_v0 = vmov 0.0   ;;  %s246_s9 = scalar_select %p245_p10, %s3863_s25, 1  ;;  %v3798_v5 = vmov 0   ;;  %v1818_v6 = vld [vmem:[%s4262_s2] sm:$0xf]  ;;  %vm267_vm0 = vcmask 1031168  }
  0x14   : > { %348 = vmatprep.mubr.f32.mxu0 %v3790_v0  ;;  %419 = vmatprep.mubr.f32.mxu1 %v3790_v0  ;;  %vm275_vm1 = vcmask 1043456   ;;  %v3483_v13 = vld [vmem:[%s4261_s1 + $0x4] sm:$0xf]  ;;  %vm271_vm2 = vcmask 31744   ;;  %vm595_vm3 = vcmask 1014784   ;;  %vm772_vm4 = vcmask 687104  }
  0x15   : > { %s3601_s10 = sshll.u32 %s246_s9, 4  ;;  %3722 = vset.pattern.permute.xlu0 %v3798_v5  ;;  %3723 = vset.pattern.permute.xlu1 %v3798_v5  ;;  %v250_v20 = vld [vmem:[%s4261_s1] sm:$0xf]  ;;  %v3496_v25 = vld [vmem:[%s4261_s1 + $0x8] sm:$0xf]  ;;  %vm949_vm5 = vcmask 670720  }
  0x16   : > { %s249_s13 = scalar_lea.vmem %s4260_s0, %s3601_s10  ;;  %v3503_v29 = vld [vmem:[%s4261_s1 + $0xc] sm:$0xf]  ;;  %v3510_v37 = vld [vmem:[%s4261_s1 + $0x10] sm:$0xf]  ;;  %vm1126_vm6 = vcmask 654336   ;;  %vm1303_vm7 = vcmask 326656  }
  0x17   : > { %v3897_v1 = vld [vmem:[%s249_s13 + $0x8] sm:$0xff]  ;;  %v3899_v2 = vld [vmem:[%s249_s13] sm:$0xff]  ;;  %v3517_v45 = vld [vmem:[%s4261_s1 + $0x14] sm:$0xf]  ;;  %vm1480_vm8 = vcmask 310272   ;;  %vm1657_vm9 = vcmask 293888  }
  0x18   : > { %263 = vrot.lane.b32.xlu0 %v3897_v1, %s3791_s14  ;;  %259 = vrot.lane.b32.xlu1 %v3899_v2, %s3791_s14  ;;  %v257_v3 = vcombine.high %v3899_v2, %v3899_v2  ;;  %v3909_v4 = vcombine.high %v3897_v1, %v3897_v1  ;;  %v3524_v53 = vld [vmem:[%s4261_s1 + $0x18] sm:$0xf]  ;;  %v3531_v61 = vld [vmem:[%s4261_s1 + $0x1c] sm:$0xf]  ;;  %vm1867_vm10 = vcmask 97284   ;;  %vm3800_vm11 = vmmov 0  }
  0x19   : > { %vm1868_vm12 = vmor %vm1867_vm10, %vm275_vm1  ;;  %vm1870_vm13 = vcmask 1043552   ;;  %s3805_s9 = smov 83   ;;  %vm1886_vm14 = vcmask 1039360   ;;  %vm2370_vm15 = vcmask 867328  }
  0x1c   : > { %591 = vrot.lane.b32.xlu1 %v3897_v1, %s3792_s15  ;;  %261 = vrot.lane.b32.xlu0 %v257_v3, %s3791_s14 }
  0x20   : > { %265 = vrot.lane.b32.xlu1 %v3909_v4, %s3791_s14  ;;  %589 = vrot.lane.b32.xlu0 %v257_v3, %s3792_s15 }
  0x24   : > { %593 = vrot.lane.b32.xlu1 %v3909_v4, %s3792_s15  ;;  %587 = vrot.lane.b32.xlu0 %v3899_v2, %s3792_s15 }
  0x28   : > { %768 = vrot.lane.b32.xlu1 %v3897_v1, %s3793_s16  ;;  %766 = vrot.lane.b32.xlu0 %v257_v3, %s3793_s16 }
  0x2c   : > { %770 = vrot.lane.b32.xlu1 %v3909_v4, %s3793_s16  ;;  %764 = vrot.lane.b32.xlu0 %v3899_v2, %s3793_s16 }
  0x30   : > { %945 = vrot.lane.b32.xlu1 %v3897_v1, %s3794_s17  ;;  %943 = vrot.lane.b32.xlu0 %v257_v3, %s3794_s17 }
  0x34   : > { %947 = vrot.lane.b32.xlu1 %v3909_v4, %s3794_s17  ;;  %941 = vrot.lane.b32.xlu0 %v3899_v2, %s3794_s17 }
  0x38   : > { %1122 = vrot.lane.b32.xlu1 %v3897_v1, %s3795_s18  ;;  %1120 = vrot.lane.b32.xlu0 %v257_v3, %s3795_s18 }
  0x3c   : > { %1124 = vrot.lane.b32.xlu1 %v3909_v4, %s3795_s18  ;;  %1118 = vrot.lane.b32.xlu0 %v3899_v2, %s3795_s18  ;;  %s3666_s18 = smul.u32 192, %s3863_s25 }
  0x40   : > { %1299 = vrot.lane.b32.xlu1 %v3897_v1, %s3796_s19  ;;  %1297 = vrot.lane.b32.xlu0 %v257_v3, %s3796_s19 }
  0x44   : > { %1301 = vrot.lane.b32.xlu1 %v3909_v4, %s3796_s19  ;;  %1295 = vrot.lane.b32.xlu0 %v3899_v2, %s3796_s19 }
  0x48   : > { %1476 = vrot.lane.b32.xlu1 %v3897_v1, %s3797_s20  ;;  %1474 = vrot.lane.b32.xlu0 %v257_v3, %s3797_s20 }
  0x4c   : > { %1478 = vrot.lane.b32.xlu1 %v3909_v4, %s3797_s20  ;;  %1472 = vrot.lane.b32.xlu0 %v3899_v2, %s3797_s20  ;;  %s3801_s20 = smov 127  }
  0x50   : > { %1653 = vrot.lane.b32.xlu1 %v3897_v1, %s3799_s26  ;;  %1651 = vrot.lane.b32.xlu0 %v257_v3, %s3799_s26 }
  0x54   : > { %1655 = vrot.lane.b32.xlu1 %v3909_v4, %s3799_s26  ;;  %1649 = vrot.lane.b32.xlu0 %v3899_v2, %s3799_s26  ;;  %s3802_s26 = smov 105  }
  0x58   : > { %1821 = vperm.xlu0 %3722, %v1818_v6   ;;  %v3538_v6 = vld [vmem:[%s4261_s1 + $0x20] sm:$0xf] }
  0x8a   : > { %v264_v7 = vpop.permute.xlu0 %263  ;;  %v260_v8 = vpop.permute.xlu1 %259 }
  0x8e   : > { %v592_v9 = vpop.permute.xlu1 %591  ;;  %v262_v10 = vpop.permute.xlu0 %261 }
  0x8f   : > { %v269_v11 = vsel %vm267_vm0, %v262_v10, %v264_v7  ;;  %v268_v12 = vsel %vm267_vm0, %v260_v8, %v262_v10 }
  0x90   : > { %3484 = vmatprep.subr.msk.mxu0 %vm275_vm1, %v269_v11 }
  0x91   : > { %3485 = vmatpush1.msk.msra.mxu0 %vm275_vm1, %v268_v12 }
  0x92   : > { %v266_v14 = vpop.permute.xlu1 %265  ;;  %3490 = vmatprep.subr.msk.mxu0 %vm275_vm1, %v257_v3  ;;  %v590_v15 = vpop.permute.xlu0 %589  ;;  %3486 = vmatmul.mubr.msk.f32.vlgmr.msra.gmra.mxu0 %vm271_vm2, %v3483_v13 }
  0x93   : > { %v597_v16 = vsel %vm595_vm3, %v590_v15, %v592_v9  ;;  %3487 = vmatprep.subr.msk.mxu1 %vm275_vm1, %v266_v14  ;;  %3491 = vmatpush1.msk.msra.mxu0 %vm275_vm1, %v3899_v2  ;;  %v270_v17 = vsel %vm267_vm0, %v264_v7, %v266_v14 }
  0x94   : > { %3488 = vmatpush1.msk.msra.mxu1 %vm275_vm1, %v270_v17  ;;  %3497 = vmatprep.subr.msk.mxu0 %vm275_vm1, %v597_v16 }
  0x95   : > { %3489 = vmatmul.mubr.msk.f32.vlgmr.msra.gmra.mxu1 %vm271_vm2, %v3483_v13  ;;  %3493 = vmatprep.subr.msk.mxu1 %vm275_vm1, %v3909_v4 }
  0x96   : > { %3494 = vmatpush1.msk.msra.mxu1 %vm275_vm1, %v3897_v1  ;;  %v594_v18 = vpop.permute.xlu1 %593  ;;  %v588_v19 = vpop.permute.xlu0 %587  ;;  %572 = vmatprep.mubr.f32.mxu1 %v3790_v0 }
  0x97   : > { %v598_v21 = vsel %vm595_vm3, %v592_v9, %v594_v18  ;;  %v596_v22 = vsel %vm595_vm3, %v588_v19, %v590_v15  ;;  %3500 = vmatprep.subr.msk.mxu1 %vm275_vm1, %v594_v18  ;;  %501 = vmatprep.mubr.f32.mxu0 %v3790_v0  ;;  %vm2539_vm3 = vcmask 859136  }
  0x98   : > { %3492 = vmatmul.mubr.msk.f32.vlgmr.msra.gmra.mxu0 %vm271_vm2, %v250_v20 }
  0x99   : > { %3495 = vmatmul.mubr.msk.f32.vlgmr.msra.gmra.mxu1 %vm271_vm2, %v250_v20  ;;  %3498 = vmatpush1.msk.msra.mxu0 %vm275_vm1, %v596_v22 }
  0x9a   : > { %3501 = vmatpush1.msk.msra.mxu1 %vm275_vm1, %v598_v21  ;;  %v769_v23 = vpop.permute.xlu1 %768  ;;  %v767_v24 = vpop.permute.xlu0 %766  ;;  %745 = vmatprep.mubr.f32.mxu1 %v3790_v0 }
  0x9b   : > { %v774_v26 = vsel %vm772_vm4, %v767_v24, %v769_v23  ;;  %674 = vmatprep.mubr.f32.mxu0 %v3790_v0 }
  0x9c   : > { %3504 = vmatprep.subr.msk.mxu0 %vm275_vm1, %v774_v26  ;;  %3499 = vmatmul.mubr.msk.f32.vlgmr.msra.gmra.mxu0 %vm271_vm2, %v3496_v25 }
  0x9d   : > { %3502 = vmatmul.mubr.msk.f32.vlgmr.msra.gmra.mxu1 %vm271_vm2, %v3496_v25  ;;  %851 = vmatprep.mubr.f32.mxu0 %v3790_v0 }
  0x9e   : > { %v771_v27 = vpop.permute.xlu1 %770  ;;  %v765_v28 = vpop.permute.xlu0 %764  ;;  %922 = vmatprep.mubr.f32.mxu1 %v3790_v0 }
  0x9f   : > { %v775_v30 = vsel %vm772_vm4, %v769_v23, %v771_v27  ;;  %v773_v31 = vsel %vm772_vm4, %v765_v28, %v767_v24  ;;  %3507 = vmatprep.subr.msk.mxu1 %vm275_vm1, %v771_v27 }
  0xa0   : > { %3508 = vmatpush1.msk.msra.mxu1 %vm275_vm1, %v775_v30  ;;  %3505 = vmatpush1.msk.msra.mxu0 %vm275_vm1, %v773_v31 }
  0xa1   : > { %3509 = vmatmul.mubr.msk.f32.vlgmr.msra.gmra.mxu1 %vm271_vm2, %v3503_v29  ;;  %3506 = vmatmul.mubr.msk.f32.vlgmr.msra.gmra.mxu0 %vm271_vm2, %v3503_v29 }
  0xa2   : > { %v946_v32 = vpop.permute.xlu1 %945  ;;  %v944_v33 = vpop.permute.xlu0 %943  ;;  %1099 = vmatprep.mubr.f32.mxu1 %v3790_v0  ;;  %1028 = vmatprep.mubr.f32.mxu0 %v3790_v0 }
  0xa3   : > { %v951_v34 = vsel %vm949_vm5, %v944_v33, %v946_v32 }
  0xa4   : > { %3511 = vmatprep.subr.msk.mxu0 %vm275_vm1, %v951_v34 }
  0xa6   : > { %v948_v35 = vpop.permute.xlu1 %947  ;;  %v942_v36 = vpop.permute.xlu0 %941 }
  0xa7   : > { %v952_v38 = vsel %vm949_vm5, %v946_v32, %v948_v35  ;;  %v950_v39 = vsel %vm949_vm5, %v942_v36, %v944_v33  ;;  %3514 = vmatprep.subr.msk.mxu1 %vm275_vm1, %v948_v35 }
  0xa8   : > { %3515 = vmatpush1.msk.msra.mxu1 %vm275_vm1, %v952_v38  ;;  %3512 = vmatpush1.msk.msra.mxu0 %vm275_vm1, %v950_v39 }
  0xa9   : > { %3516 = vmatmul.mubr.msk.f32.vlgmr.msra.gmra.mxu1 %vm271_vm2, %v3510_v37  ;;  %3513 = vmatmul.mubr.msk.f32.vlgmr.msra.gmra.mxu0 %vm271_vm2, %v3510_v37 }
  0xaa   : > { %v1123_v40 = vpop.permute.xlu1 %1122  ;;  %v1121_v41 = vpop.permute.xlu0 %1120  ;;  %1276 = vmatprep.mubr.f32.mxu1 %v3790_v0  ;;  %1205 = vmatprep.mubr.f32.mxu0 %v3790_v0 }
  0xab   : > { %v1128_v42 = vsel %vm1126_vm6, %v1121_v41, %v1123_v40 }
  0xac   : > { %3518 = vmatprep.subr.msk.mxu0 %vm275_vm1, %v1128_v42 }
  0xae   : > { %v1125_v43 = vpop.permute.xlu1 %1124  ;;  %v1119_v44 = vpop.permute.xlu0 %1118 }
  0xaf   : > { %v1129_v46 = vsel %vm1126_vm6, %v1123_v40, %v1125_v43  ;;  %v1127_v47 = vsel %vm1126_vm6, %v1119_v44, %v1121_v41  ;;  %3521 = vmatprep.subr.msk.mxu1 %vm275_vm1, %v1125_v43  ;;  %vm3052_vm6 = vcmask 678912  }
  0xb0   : > { %3522 = vmatpush1.msk.msra.mxu1 %vm275_vm1, %v1129_v46  ;;  %3519 = vmatpush1.msk.msra.mxu0 %vm275_vm1, %v1127_v47 }
  0xb1   : > { %3523 = vmatmul.mubr.msk.f32.vlgmr.msra.gmra.mxu1 %vm271_vm2, %v3517_v45  ;;  %3520 = vmatmul.mubr.msk.f32.vlgmr.msra.gmra.mxu0 %vm271_vm2, %v3517_v45 }
  0xb2   : > { %v1300_v48 = vpop.permute.xlu1 %1299  ;;  %v1298_v49 = vpop.permute.xlu0 %1297  ;;  %1382 = vmatprep.mubr.f32.mxu0 %v3790_v0  ;;  %1453 = vmatprep.mubr.f32.mxu1 %v3790_v0 }
  0xb3   : > { %v1305_v50 = vsel %vm1303_vm7, %v1298_v49, %v1300_v48 }
  0xb4   : > { %3525 = vmatprep.subr.msk.mxu0 %vm275_vm1, %v1305_v50 }
  0xb6   : > { %v1302_v51 = vpop.permute.xlu1 %1301  ;;  %v1296_v52 = vpop.permute.xlu0 %1295 }
  0xb7   : > { %v1306_v54 = vsel %vm1303_vm7, %v1300_v48, %v1302_v51  ;;  %v1304_v55 = vsel %vm1303_vm7, %v1296_v52, %v1298_v49  ;;  %3528 = vmatprep.subr.msk.mxu1 %vm275_vm1, %v1302_v51 }
  0xb8   : > { %3526 = vmatpush1.msk.msra.mxu0 %vm275_vm1, %v1304_v55  ;;  %3529 = vmatpush1.msk.msra.mxu1 %vm275_vm1, %v1306_v54 }
  0xb9   : > { %3527 = vmatmul.mubr.msk.f32.vlgmr.msra.gmra.mxu0 %vm271_vm2, %v3524_v53  ;;  %3530 = vmatmul.mubr.msk.f32.vlgmr.msra.gmra.mxu1 %vm271_vm2, %v3524_v53  ;;  %v1834_v53 = vlaneseq }
  0xba   : > { %v1477_v56 = vpop.permute.xlu1 %1476  ;;  %v1475_v57 = vpop.permute.xlu0 %1474  ;;  %1559 = vmatprep.mubr.f32.mxu0 %v3790_v0  ;;  %1630 = vmatprep.mubr.f32.mxu1 %v3790_v0 }
  0xbb   : > { %v1482_v58 = vsel %vm1480_vm8, %v1475_v57, %v1477_v56 }
  0xbc   : > { %3532 = vmatprep.subr.msk.mxu0 %vm275_vm1, %v1482_v58 }
  0xbe   : > { %v1479_v59 = vpop.permute.xlu1 %1478  ;;  %v1473_v60 = vpop.permute.xlu0 %1472 }
  0xbf   : > { %v1483_v62 = vsel %vm1480_vm8, %v1477_v56, %v1479_v59  ;;  %v1481_v63 = vsel %vm1480_vm8, %v1473_v60, %v1475_v57  ;;  %3535 = vmatprep.subr.msk.mxu1 %vm275_vm1, %v1479_v59  ;;  %v1835_v60 = vshrl.u32 %v1834_v53, 7 }
  0xc0   : > { %3533 = vmatpush1.msk.msra.mxu0 %vm275_vm1, %v1481_v63  ;;  %3536 = vmatpush1.msk.msra.mxu1 %vm275_vm1, %v1483_v62 }
  0xc1   : > { %3534 = vmatmul.mubr.msk.f32.vlgmr.msra.gmra.mxu0 %vm271_vm2, %v3531_v61  ;;  %3537 = vmatmul.mubr.msk.f32.vlgmr.msra.gmra.mxu1 %vm271_vm2, %v3531_v61 }
  0xc2   : > { %v1654_v1 = vpop.permute.xlu1 %1653  ;;  %v1652_v2 = vpop.permute.xlu0 %1651  ;;  %1736 = vmatprep.mubr.f32.mxu0 %v3790_v0  ;;  %1807 = vmatprep.mubr.f32.mxu1 %v3790_v0 }
  0xc3   : > { %v1659_v3 = vsel %vm1657_vm9, %v1652_v2, %v1654_v1 }
  0xc4   : > { %3539 = vmatprep.subr.msk.mxu0 %vm275_vm1, %v1659_v3 }
  0xc6   : > { %v1656_v4 = vpop.permute.xlu1 %1655  ;;  %v1650_v5 = vpop.permute.xlu0 %1649 }
  0xc7   : > { %v1660_v7 = vsel %vm1657_vm9, %v1654_v1, %v1656_v4  ;;  %v1658_v8 = vsel %vm1657_vm9, %v1650_v5, %v1652_v2  ;;  %3542 = vmatprep.subr.msk.mxu1 %vm275_vm1, %v1656_v4 }
  0xc8   : > { %3540 = vmatpush1.msk.msra.mxu0 %vm275_vm1, %v1658_v8  ;;  %3543 = vmatpush1.msk.msra.mxu1 %vm275_vm1, %v1660_v7 }
  0xc9   : > { %3541 = vmatmul.mubr.msk.f32.vlgmr.msra.gmra.mxu0 %vm271_vm2, %v3538_v6  ;;  %3544 = vmatmul.mubr.msk.f32.vlgmr.msra.gmra.mxu1 %vm271_vm2, %v3538_v6 }
  0xca   : > { %3620 = vmatprep.subr.mxu1 %v3790_v0  ;;  %1962 = vmatprep.mubr.f32.mxu0 %v3790_v0 }
  0xcb   : > { %3622 = vmatprep.mubr.msk.f32.mxu1 %vm3800_vm11, %v3790_v0 }
  0xd3   : > { %v1822_v6 = vpop.permute.xlu0 %1821 }
 0x152   : > { %v350_v9 = vpop.f32.mrf.mxu0 }
 0x154   : > { %v352_v10 = vpop.f32.mrf.mxu0 }
 0x155   : > { %v421_v11 = vpop.f32.mrf.mxu1 }
 0x157   : > { %v423_v12 = vpop.f32.mrf.mxu1 }
 0x158   : > { %v503_v13 = vpop.f32.mrf.mxu0 }
 0x159   : > { %v574_v14 = vpop.f32.mrf.mxu1  ;;  %v504_v28 = vadd.f32 %v503_v13, %v350_v9  ;;  %v1836_v9 = vsub.s32 0, %v1835_v60 }
 0x15a   : > { %v505_v15 = vpop.f32.mrf.mxu0  ;;  %v575_v32 = vadd.f32 %v574_v14, %v421_v11  ;;  %v1844_v11 = vsub.s32 2, %v1835_v60 }
 0x15b   : > { %v576_v16 = vpop.f32.mrf.mxu1  ;;  %v506_v29 = vadd.f32 %v505_v15, %v352_v10  ;;  %v1840_v10 = vsub.s32 1, %v1835_v60 }
 0x15c   : > { %v676_v17 = vpop.f32.mrf.mxu0  ;;  %v577_v37 = vadd.f32 %v576_v16, %v423_v12  ;;  %v1848_v12 = vsub.s32 3, %v1835_v60 }
 0x15d   : > { %v747_v18 = vpop.f32.mrf.mxu1  ;;  %v752_v33 = vadd.f32 %v676_v17, %v504_v28  ;;  %v1832_v17 = vld [vmem:[%s4265_s5] sm:$0xf] }
 0x15e   : > { %v678_v19 = vpop.f32.mrf.mxu0  ;;  %v754_v38 = vadd.f32 %v747_v18, %v575_v32 }
 0x15f   : > { %v749_v20 = vpop.f32.mrf.mxu1  ;;  %v753_v34 = vadd.f32 %v678_v19, %v506_v29 }
 0x160   : > { %v755_v43 = vadd.f32 %v749_v20, %v577_v37 }
 0x161   : > { %v853_v21 = vpop.f32.mrf.mxu0  ;;  %v924_v22 = vpop.f32.mrf.mxu1 }
 0x162   : > { %v929_v39 = vadd.f32 %v853_v21, %v752_v33  ;;  %v931_v44 = vadd.f32 %v924_v22, %v754_v38 }
 0x163   : > { %v855_v23 = vpop.f32.mrf.mxu0  ;;  %v926_v24 = vpop.f32.mrf.mxu1 }
 0x164   : > { %v930_v40 = vadd.f32 %v855_v23, %v753_v34  ;;  %v932_v49 = vadd.f32 %v926_v24, %v755_v43  ;;  %v1837_v24 = vrot.slane %v1832_v17, %v1836_v9 }
 0x169   : > { %v1030_v25 = vpop.f32.mrf.mxu0  ;;  %v1101_v26 = vpop.f32.mrf.mxu1 }
 0x16a   : > { %v1106_v45 = vadd.f32 %v1030_v25, %v929_v39  ;;  %v1108_v50 = vadd.f32 %v1101_v26, %v931_v44  ;;  %v1841_v25 = vrot.slane %v1832_v17, %v1840_v10  ;;  %v1845_v26 = vrot.slane %v1832_v17, %v1844_v11 }
 0x16b   : > { %v1032_v27 = vpop.f32.mrf.mxu0  ;;  %v1103_v30 = vpop.f32.mrf.mxu1 }
 0x16c   : > { %v1107_v47 = vadd.f32 %v1032_v27, %v930_v40  ;;  %v1109_v57 = vadd.f32 %v1103_v30, %v932_v49  ;;  %v1849_v27 = vrot.slane %v1832_v17, %v1848_v12  ;;  %v3545_v49 = vld [vmem:[%s4263_s3 + $0x4] sm:$0xf] }
 0x171   : > { %v1207_v31 = vpop.f32.mrf.mxu0  ;;  %v1278_v35 = vpop.f32.mrf.mxu1 }
 0x172   : > { %v1283_v51 = vadd.f32 %v1207_v31, %v1106_v45  ;;  %v1285_v58 = vadd.f32 %v1278_v35, %v1108_v50 }
 0x173   : > { %v1209_v36 = vpop.f32.mrf.mxu0  ;;  %v1280_v41 = vpop.f32.mrf.mxu1 }
 0x174   : > { %v1284_v54 = vadd.f32 %v1209_v36, %v1107_v47  ;;  %v1286_v61 = vadd.f32 %v1280_v41, %v1109_v57 }
 0x179   : > { %v1384_v42 = vpop.f32.mrf.mxu0  ;;  %v1455_v46 = vpop.f32.mrf.mxu1 }
 0x17a   : > { %v1460_v59 = vadd.f32 %v1384_v42, %v1283_v51  ;;  %v1462_v62 = vadd.f32 %v1455_v46, %v1285_v58  ;;  %v3562_v58 = vld [vmem:[%s4263_s3 + $0xc] sm:$0xf] }
 0x17b   : > { %v1386_v48 = vpop.f32.mrf.mxu0  ;;  %v1457_v52 = vpop.f32.mrf.mxu1 }
 0x17c   : > { %v1461_v63 = vadd.f32 %v1386_v48, %v1284_v54  ;;  %v1463_v3 = vadd.f32 %v1457_v52, %v1286_v61  ;;  %v3381_v48 = vld [vmem:[%s4264_s4] sm:$0xf]  ;;  %v3568_v61 = vld [vmem:[%s4263_s3 + $0x10] sm:$0xf] }
 0x17d   : > { %v1872_v52 = vld [vmem:[%s4263_s3] sm:$0xf] }
 0x181   : > { %v1561_v55 = vpop.f32.mrf.mxu0  ;;  %v1632_v56 = vpop.f32.mrf.mxu1 }
 0x182   : > { %v1637_v4 = vadd.f32 %v1561_v55, %v1460_v59  ;;  %v1639_v5 = vadd.f32 %v1632_v56, %v1462_v62  ;;  %v3556_v55 = vld [vmem:[%s4263_s3 + $0x8] sm:$0xf] }
 0x183   : > { %v1563_v1 = vpop.f32.mrf.mxu0  ;;  %v1634_v2 = vpop.f32.mrf.mxu1 }
 0x184   : > { %v1638_v13 = vadd.f32 %v1563_v1, %v1461_v63  ;;  %v1640_v14 = vadd.f32 %v1634_v2, %v1463_v3  ;;  %v3574_v3 = vld [vmem:[%s4263_s3 + $0x14] sm:$0xf] }
 0x189   : > { %v1738_v7 = vpop.f32.mrf.mxu0  ;;  %v1809_v8 = vpop.f32.mrf.mxu1 }
 0x18a   : > { %v1814_v15 = vadd.f32 %v1738_v7, %v1637_v4  ;;  %v1816_v16 = vadd.f32 %v1809_v8, %v1639_v5 }
 0x18b   : > { %v1740_v18 = vpop.f32.mrf.mxu0  ;;  %v1811_v19 = vpop.f32.mrf.mxu1 }
 0x18c   : > { %v1815_v20 = vadd.f32 %v1740_v18, %v1638_v13  ;;  %v1817_v21 = vadd.f32 %v1811_v19, %v1640_v14  ;;  %v1824_v22 = vadd.f32 %v1822_v6, %v1814_v15  ;;  %v1826_v23 = vadd.f32 %v1822_v6, %v1816_v16 }
 0x18e   : > { %v1825_v28 = vadd.f32 %v1822_v6, %v1815_v20  ;;  %v1827_v29 = vadd.f32 %v1822_v6, %v1817_v21  ;;  %v1828_v30 = vmax.f32 %v1824_v22, 0.0  ;;  %v1830_v31 = vmax.f32 %v1826_v23, 0.0  ;;  %v3580_v22 = vld [vmem:[%s4263_s3 + $0x18] sm:$0xf] }
 0x190   : > { %v1829_v32 = vmax.f32 %v1825_v28, 0.0  ;;  %v1831_v33 = vmax.f32 %v1827_v29, 0.0  ;;  %v1854_v34 = vmul.f32 %v1837_v24, %v1828_v30  ;;  %v1856_v36 = vmul.f32 %v1845_v26, %v1830_v31  ;;  %v3586_v31 = vld [vmem:[%s4263_s3 + $0x1c] sm:$0xf] }
 0x192   : > { %v1855_v35 = vmul.f32 %v1841_v25, %v1829_v32  ;;  %v1857_v37 = vmul.f32 %v1849_v27, %v1831_v33 }
 0x194   : > { %v4066_v38 = vcombine.low %v1854_v34, %v1855_v35  ;;  %v1863_v39 = vcombine.low %v1856_v36, %v1857_v37  ;;  %v4075_v44 = vcombine.low %v1855_v35, %v1855_v35  ;;  %v3592_v36 = vld [vmem:[%s4263_s3 + $0x20] sm:$0xf] }
 0x196   : > { %1869 = vst.msk [vmem:[#allocation2 + $0x8] sm:$0xff] %vm1868_vm12, %v1863_v39 }
 0x197   : > { %1871 = vst.msk [vmem:[#allocation2 + $0xc] sm:$0xf] %vm1870_vm13, %v3790_v0 }
 0x19d   : > { %v2192_v40 = vld [vmem:[#allocation2 + $0x8] sm:$0xf] }
 0x19e   : > { %v1874_v41 = vld [vmem:[#allocation2 + $0x8] sm:$0xf]  ;;  %2200 = vrot.lane.b32.xlu0 %v2192_v40, %s3791_s14 }
 0x19f   : > { %1884 = vrot.lane.b32.xlu1 %v1874_v41, %s3801_s20  ;;  %v2529_v42 = vld [vmem:[#allocation2 + $0x8] sm:$0xf] }
 0x1a0   : > { %v2360_v43 = vld [vmem:[#allocation2 + $0x8] sm:$0xf] }
 0x1a1   : > { %v2698_v45 = vld [vmem:[#allocation2 + $0x8] sm:$0xf] }
 0x1a2   : > { %2537 = vrot.lane.b32.xlu0 %v2529_v42, %s3802_s26  ;;  %v2867_v46 = vld [vmem:[#allocation2 + $0x8] sm:$0xff] }
 0x1a3   : > { %2368 = vrot.lane.b32.xlu1 %v2360_v43, %s3803_s28  ;;  %v2871_v47 = vcombine.high %v2867_v46, %v2867_v46 }
 0x1a6   : > { %1880 = vrot.lane.b32.xlu0 %v4066_v38, %s3801_s20 }
 0x1a7   : > { %2196 = vrot.lane.b32.xlu1 %v4066_v38, %s3791_s14 }
 0x1aa   : > { %2364 = vrot.lane.b32.xlu0 %v4066_v38, %s3803_s28 }
 0x1ab   : > { %2533 = vrot.lane.b32.xlu1 %v4066_v38, %s3802_s26 }
 0x1ae   : > { %2702 = vrot.lane.b32.xlu0 %v4066_v38, %s3804_s29 }
 0x1af   : > { %1882 = vrot.lane.b32.xlu1 %v4075_v44, %s3801_s20 }
 0x1b2   : > { %2366 = vrot.lane.b32.xlu0 %v4075_v44, %s3803_s28  ;;  %s3416_s28 = scalar_lea.hbm %s4266_s6, %s3666_s18 }
 0x1b3   : > { %2706 = vrot.lane.b32.xlu1 %v2698_v45, %s3804_s29 }
 0x1b6   : > { %2876 = vrot.lane.b32.xlu0 %v2867_v46, %s3793_s16 }
 0x1b7   : > { %2198 = vrot.lane.b32.xlu1 %v4075_v44, %s3791_s14  ;;  %s3806_s14 = smov [#allocation3]  }
 0x1b8   : > { %s3732_s10 = sshll.u32 %s3806_s14, 4  ;;  %s3733_s10 = int_to_ptr.vmem [resolvable:$false] %s3732_s10 }
 0x1b9   : > { %s3734_s25 = scalar_lea.vmem %s3733_s10, 384 }
 0x1ba   : > { %2704 = vrot.lane.b32.xlu0 %v4075_v44, %s3804_s29 }
 0x1bb   : > { %2872 = vrot.lane.b32.xlu1 %v4066_v38, %s3793_s16 }
 0x1be   : > { %3046 = vrot.lane.b32.xlu0 %v4075_v44, %s3805_s9 }
 0x1bf   : > { %2535 = vrot.lane.b32.xlu1 %v4075_v44, %s3802_s26 }
 0x1c2   : > { %2878 = vrot.lane.b32.xlu0 %v2871_v47, %s3793_s16 }
 0x1c3   : > { %3048 = vrot.lane.b32.xlu1 %v2867_v46, %s3805_s9 }
 0x1c6   : > { %3219 = vrot.lane.b32.xlu0 %v4075_v44, %s3794_s17 }
 0x1c7   : > { %2874 = vrot.lane.b32.xlu1 %v4075_v44, %s3793_s16 }
 0x1ca   : > { %3050 = vrot.lane.b32.xlu0 %v2871_v47, %s3805_s9 }
 0x1cb   : > { %3044 = vrot.lane.b32.xlu1 %v4066_v38, %s3805_s9 }
 0x1ce   : > { %3223 = vrot.lane.b32.xlu0 %v2871_v47, %s3794_s17 }
 0x1cf   : > { %3221 = vrot.lane.b32.xlu1 %v2867_v46, %s3794_s17 }
 0x1d3   : > { %3217 = vrot.lane.b32.xlu1 %v4066_v38, %s3794_s17  ;;  %s242_s17 = sand.u32 1, %s3780_s22  }
 0x1d4   : > { %s3665_s13 = smul.u32 12, %s242_s17  ;;  %s3404_s29 = scalar_lea.sflag [#allocation4], %s242_s17 }
 0x1d6   : > { %s244_s15 = scalar_lea.vmem [#allocation3], %s3665_s13 }
 0x1d7   : > { %3384 = vperm.xlu1 %3723, %v3381_v48   ;;  %s3418_s19 = sshll.u32 %s244_s15, 4  ;;  %s3419_s19 = int_to_ptr.vmem [resolvable:$true] %s3418_s19 }
 0x1d8   : > { %s3728_s9 = scalar_lea.vmem %s3419_s19, 192  ;;  %p3735_p0 = scmp.lt.s32.totalorder %s3419_s19, %s3733_s10 }
 0x1d9   : > { %p3729_p11 = scmp.ne.s32.totalorder %s3419_s19, %s3728_s9  ;;  %p3736_p1 = scmp.lt.s32.totalorder %s3734_s25, %s3728_s9 }
 0x1db   : > { %p3730_p12 = pnand %p3729_p11, %p3880_p5  ;;  %p3737_p2 = por %p3736_p1, %p3735_p0 }
 0x1dd   : > { %p3731_p13 = pneg %p3730_p12 }
 0x1df   : > { %p3738_p3 = pnand %p3737_p2, %p3731_p13 }
 0x210   : > { %v2201_v50 = vpop.permute.xlu0 %2200 }
 0x211   : > { %v1885_v51 = vpop.permute.xlu1 %1884 }
 0x212   : > { %3621 = vmatpush3.msk.msra.mxu1 %vm275_vm1, %v1885_v51 }
 0x213   : > { %3623 = vmatmul.mubr.msk.f32.vlgmr.msra.gmra.mxu1 %vm271_vm2, %v3545_v49  ;;  %3625 = vmatprep.subr.mxu1 %v3790_v0 }
 0x214   : > { %3626 = vmatpush3.msk.msra.mxu1 %vm275_vm1, %v1874_v41  ;;  %3627 = vmatprep.mubr.msk.f32.mxu1 %vm3800_vm11, %v3790_v0  ;;  %v4113_v53 = vpop.permute.xlu0 %2537 }
 0x215   : > { %v2369_v54 = vpop.permute.xlu1 %2368  ;;  %3630 = vmatprep.subr.mxu1 %v3790_v0 }
 0x217   : > { %3628 = vmatmul.mubr.msk.f32.vlgmr.msra.gmra.mxu1 %vm271_vm2, %v1872_v52 }
 0x218   : > { %3631 = vmatpush3.msk.msra.mxu1 %vm275_vm1, %v2201_v50  ;;  %3632 = vmatprep.mubr.msk.f32.mxu1 %vm3800_vm11, %v3790_v0  ;;  %v1881_v57 = vpop.permute.xlu0 %1880 }
 0x219   : > { %v2197_v56 = vpop.permute.xlu1 %2196  ;;  %3635 = vmatprep.subr.mxu1 %v3790_v0 }
 0x21b   : > { %3633 = vmatmul.mubr.msk.f32.vlgmr.msra.gmra.mxu1 %vm271_vm2, %v3556_v55 }
 0x21c   : > { %3636 = vmatpush3.msk.msra.mxu1 %vm275_vm1, %v2369_v54  ;;  %3637 = vmatprep.mubr.msk.f32.mxu1 %vm3800_vm11, %v3790_v0  ;;  %v2365_v60 = vpop.permute.xlu0 %2364 }
 0x21d   : > { %v2534_v59 = vpop.permute.xlu1 %2533  ;;  %3640 = vmatprep.subr.mxu1 %v3790_v0 }
 0x21f   : > { %3638 = vmatmul.mubr.msk.f32.vlgmr.msra.gmra.mxu1 %vm271_vm2, %v3562_v58 }
 0x220   : > { %3641 = vmatpush3.msk.msra.mxu1 %vm275_vm1, %v4113_v53  ;;  %3642 = vmatprep.mubr.msk.f32.mxu1 %vm3800_vm11, %v3790_v0  ;;  %v2703_v62 = vpop.permute.xlu0 %2702 }
 0x221   : > { %v1883_v63 = vpop.permute.xlu1 %1882  ;;  %3645 = vmatprep.subr.mxu1 %v3790_v0 }
 0x222   : > { %v1887_v1 = vsel %vm1886_vm14, %v1881_v57, %v1883_v63  ;;  %v1888_v2 = vsel %vm1886_vm14, %v1883_v63, %v1885_v51 }
 0x223   : > { %3546 = vmatprep.subr.msk.mxu0 %vm275_vm1, %v1888_v2  ;;  %3643 = vmatmul.mubr.msk.f32.vlgmr.msra.gmra.mxu1 %vm271_vm2, %v3568_v61 }
 0x224   : > { %3547 = vmatpush1.msk.msra.mxu0 %vm275_vm1, %v1887_v1  ;;  %3647 = vmatprep.mubr.msk.f32.mxu1 %vm3800_vm11, %v3790_v0  ;;  %v2367_v4 = vpop.permute.xlu0 %2366 }
 0x225   : > { %3548 = vmatmul.mubr.msk.f32.vlgmr.msra.gmra.mxu0 %vm271_vm2, %v3545_v49  ;;  %3551 = vmatprep.subr.msk.mxu0 %vm275_vm1, %v4075_v44  ;;  %v2707_v5 = vpop.permute.xlu1 %2706  ;;  %v2372_v10 = vsel %vm2370_vm15, %v2367_v4, %v2369_v54  ;;  %v2371_v11 = vsel %vm2370_vm15, %v2365_v60, %v2367_v4 }
 0x226   : > { %3552 = vmatpush1.msk.msra.mxu0 %vm275_vm1, %v4066_v38  ;;  %3646 = vmatpush3.msk.msra.mxu1 %vm275_vm1, %v2707_v5 }
 0x227   : > { %2112 = vmatprep.mubr.f32.mxu0 %v3790_v0  ;;  %3648 = vmatmul.mubr.msk.f32.vlgmr.msra.gmra.mxu1 %vm271_vm2, %v3574_v3 }
 0x228   : > { %3650 = vmatprep.subr.mxu1 %v3790_v0  ;;  %3652 = vmatprep.mubr.msk.f32.mxu1 %vm3800_vm11, %v3790_v0  ;;  %v2877_v6 = vpop.permute.xlu0 %2876 }
 0x229   : > { %3553 = vmatmul.mubr.msk.f32.vlgmr.msra.gmra.mxu0 %vm271_vm2, %v1872_v52  ;;  %v2199_v7 = vpop.permute.xlu1 %2198 }
 0x22a   : > { %v2202_v8 = vsel %vm267_vm0, %v2197_v56, %v2199_v7  ;;  %v2203_v9 = vsel %vm267_vm0, %v2199_v7, %v2201_v50  ;;  %2277 = vmatprep.mubr.f32.mxu0 %v3790_v0  ;;  %vm2708_vm0 = vcmask 850944  }
 0x22b   : > { %3557 = vmatprep.subr.msk.mxu0 %vm275_vm1, %v2203_v9 }
 0x22c   : > { %3558 = vmatpush1.msk.msra.mxu0 %vm275_vm1, %v2202_v8  ;;  %v2705_v12 = vpop.permute.xlu0 %2704 }
 0x22d   : > { %3559 = vmatmul.mubr.msk.f32.vlgmr.msra.gmra.mxu0 %vm271_vm2, %v3556_v55  ;;  %3563 = vmatprep.subr.msk.mxu0 %vm275_vm1, %v2372_v10  ;;  %v2873_v13 = vpop.permute.xlu1 %2872  ;;  %v2710_v18 = vsel %vm2708_vm0, %v2705_v12, %v2707_v5  ;;  %v2709_v19 = vsel %vm2708_vm0, %v2703_v62, %v2705_v12 }
 0x22e   : > { %3564 = vmatpush1.msk.msra.mxu0 %vm275_vm1, %v2371_v11  ;;  %2446 = vmatprep.mubr.f32.mxu0 %v3790_v0 }
 0x230   : > { %v3047_v14 = vpop.permute.xlu0 %3046 }
 0x231   : > { %3565 = vmatmul.mubr.msk.f32.vlgmr.msra.gmra.mxu0 %vm271_vm2, %v3562_v58  ;;  %v2536_v15 = vpop.permute.xlu1 %2535 }
 0x232   : > { %v2540_v16 = vsel %vm2539_vm3, %v2534_v59, %v2536_v15  ;;  %v2541_v17 = vsel %vm2539_vm3, %v2536_v15, %v4113_v53  ;;  %2615 = vmatprep.mubr.f32.mxu0 %v3790_v0 }
 0x233   : > { %3569 = vmatprep.subr.msk.mxu0 %vm275_vm1, %v2541_v17 }
 0x234   : > { %3570 = vmatpush1.msk.msra.mxu0 %vm275_vm1, %v2540_v16  ;;  %v2879_v20 = vpop.permute.xlu0 %2878 }
 0x235   : > { %3571 = vmatmul.mubr.msk.f32.vlgmr.msra.gmra.mxu0 %vm271_vm2, %v3568_v61  ;;  %3575 = vmatprep.subr.msk.mxu0 %vm275_vm1, %v2710_v18  ;;  %v3049_v21 = vpop.permute.xlu1 %3048  ;;  %v2882_v23 = vsel %vm772_vm4, %v2877_v6, %v2879_v20 }
 0x236   : > { %3576 = vmatpush1.msk.msra.mxu0 %vm275_vm1, %v2709_v19  ;;  %2784 = vmatprep.mubr.f32.mxu0 %v3790_v0  ;;  %v3054_v28 = vsel %vm3052_vm6, %v3047_v14, %v3049_v21 }
 0x237   : > { %3651 = vmatpush3.msk.msra.mxu1 %vm275_vm1, %v2882_v23 }
 0x238   : > { %3653 = vmatmul.mubr.msk.f32.vlgmr.msra.gmra.mxu1 %vm271_vm2, %v3580_v22  ;;  %3655 = vmatprep.subr.mxu1 %v3790_v0  ;;  %v3220_v24 = vpop.permute.xlu0 %3219 }
 0x239   : > { %3577 = vmatmul.mubr.msk.f32.vlgmr.msra.gmra.mxu0 %vm271_vm2, %v3574_v3  ;;  %v2875_v25 = vpop.permute.xlu1 %2874  ;;  %3657 = vmatprep.mubr.msk.f32.mxu1 %vm3800_vm11, %v3790_v0 }
 0x23a   : > { %v2880_v26 = vsel %vm772_vm4, %v2873_v13, %v2875_v25  ;;  %v2881_v27 = vsel %vm772_vm4, %v2875_v25, %v2877_v6  ;;  %2956 = vmatprep.mubr.f32.mxu0 %v3790_v0 }
 0x23b   : > { %3581 = vmatprep.subr.msk.mxu0 %vm275_vm1, %v2881_v27 }
 0x23c   : > { %3582 = vmatpush1.msk.msra.mxu0 %vm275_vm1, %v2880_v26  ;;  %v3051_v29 = vpop.permute.xlu0 %3050 }
 0x23d   : > { %3583 = vmatmul.mubr.msk.f32.vlgmr.msra.gmra.mxu0 %vm271_vm2, %v3580_v22  ;;  %3587 = vmatprep.subr.msk.mxu0 %vm275_vm1, %v3054_v28  ;;  %v3045_v30 = vpop.permute.xlu1 %3044  ;;  %v3055_v32 = vsel %vm3052_vm6, %v3049_v21, %v3051_v29 }
 0x23e   : > { %v3053_v33 = vsel %vm3052_vm6, %v3045_v30, %v3047_v14  ;;  %3129 = vmatprep.mubr.f32.mxu0 %v3790_v0  ;;  %3656 = vmatpush3.msk.msra.mxu1 %vm275_vm1, %v3055_v32 }
 0x23f   : > { %3588 = vmatpush1.msk.msra.mxu0 %vm275_vm1, %v3053_v33  ;;  %3658 = vmatmul.mubr.msk.f32.vlgmr.msra.gmra.mxu1 %vm271_vm2, %v3586_v31 }
 0x240   : > { %3660 = vmatprep.subr.mxu1 %v3790_v0  ;;  %v3224_v34 = vpop.permute.xlu0 %3223  ;;  %3662 = vmatprep.mubr.msk.f32.mxu1 %vm3800_vm11, %v3790_v0 }
 0x241   : > { %3589 = vmatmul.mubr.msk.f32.vlgmr.msra.gmra.mxu0 %vm271_vm2, %v3586_v31  ;;  %v3222_v35 = vpop.permute.xlu1 %3221 }
 0x242   : > { %v3226_v37 = vsel %vm949_vm5, %v3220_v24, %v3222_v35  ;;  %v3227_v38 = vsel %vm949_vm5, %v3222_v35, %v3224_v34  ;;  %3301 = vmatprep.mubr.f32.mxu0 %v3790_v0 }
 0x243   : > { %3593 = vmatprep.subr.msk.mxu0 %vm275_vm1, %v3226_v37  ;;  %3661 = vmatpush3.msk.msra.mxu1 %vm275_vm1, %v3227_v38 }
 0x244   : > { %3663 = vmatmul.mubr.msk.f32.vlgmr.msra.gmra.mxu1 %vm271_vm2, %v3592_v36 }
 0x245   : > { %v3218_v39 = vpop.permute.xlu1 %3217 }
 0x246   : > { %v3225_v40 = vsel %vm949_vm5, %v3218_v39, %v3220_v24 }
 0x247   : > { %3594 = vmatpush1.msk.msra.mxu0 %vm275_vm1, %v3225_v40  ;;  %vm3401_vm1 = vcmask 781312  }
 0x248   : > { %3595 = vmatmul.mubr.msk.f32.vlgmr.msra.gmra.mxu0 %vm271_vm2, %v3592_v36 }
 0x252   : > { %v3385_v25 = vpop.permute.xlu1 %3384 }
 0x2d3   : > { %v2035_v41 = vpop.f32.mrf.mxu1 }
 0x2d5   : > { %v3624_v42 = vpop.f32.mrf.mxu1 }
 0x2d7   : > { %v2185_v43 = vpop.f32.mrf.mxu1 }
 0x2d8   : > { %v2186_v57 = vadd.f32 %v2185_v43, %v2035_v41 }
 0x2d9   : > { %v3629_v44 = vpop.f32.mrf.mxu1 }
 0x2db   : > { %v2350_v45 = vpop.f32.mrf.mxu1 }
 0x2dc   : > { %v2356_v60 = vadd.f32 %v2350_v45, %v2186_v57 }
 0x2dd   : > { %v3634_v46 = vpop.f32.mrf.mxu1 }
 0x2df   : > { %v2519_v0 = vpop.f32.mrf.mxu1 }
 0x2e0   : > { %v2525_v63 = vadd.f32 %v2519_v0, %v2356_v60 }
 0x2e1   : > { %v3639_v47 = vpop.f32.mrf.mxu1 }
 0x2e3   : > { %v2688_v48 = vpop.f32.mrf.mxu1 }
 0x2e4   : > { %v2694_v6 = vadd.f32 %v2688_v48, %v2525_v63 }
 0x2e5   : > { %v1964_v49 = vpop.f32.mrf.mxu0  ;;  %v3644_v50 = vpop.f32.mrf.mxu1 }
 0x2e7   : > { %v1966_v51 = vpop.f32.mrf.mxu0  ;;  %v2857_v52 = vpop.f32.mrf.mxu1 }
 0x2e8   : > { %v2863_v13 = vadd.f32 %v2857_v52, %v2694_v6 }
 0x2e9   : > { %v2114_v53 = vpop.f32.mrf.mxu0  ;;  %v3649_v54 = vpop.f32.mrf.mxu1 }
 0x2ea   : > { %v2115_v5 = vadd.f32 %v2114_v53, %v1964_v49 }
 0x2eb   : > { %v2116_v55 = vpop.f32.mrf.mxu0 }
 0x2ec   : > { %v2117_v8 = vadd.f32 %v2116_v55, %v1966_v51 }
 0x2ed   : > { %v2279_v56 = vpop.f32.mrf.mxu0 }
 0x2ee   : > { %v2354_v9 = vadd.f32 %v2279_v56, %v2115_v5 }
 0x2ef   : > { %v2281_v58 = vpop.f32.mrf.mxu0 }
 0x2f0   : > { %v2355_v11 = vadd.f32 %v2281_v58, %v2117_v8 }
 0x2f1   : > { %v2448_v59 = vpop.f32.mrf.mxu0 }
 0x2f2   : > { %v2523_v12 = vadd.f32 %v2448_v59, %v2354_v9 }
 0x2f3   : > { %v2450_v61 = vpop.f32.mrf.mxu0 }
 0x2f4   : > { %v2524_v16 = vadd.f32 %v2450_v61, %v2355_v11 }
 0x2f5   : > { %v2617_v62 = vpop.f32.mrf.mxu0 }
 0x2f6   : > { %v2692_v17 = vadd.f32 %v2617_v62, %v2523_v12 }
 0x2f7   : > { %v2619_v1 = vpop.f32.mrf.mxu0 }
 0x2f8   : > { %v3029_v2 = vpop.f32.mrf.mxu1  ;;  %v2693_v21 = vadd.f32 %v2619_v1, %v2524_v16 }
 0x2f9   : > { %v2786_v3 = vpop.f32.mrf.mxu0  ;;  %v3035_v18 = vadd.f32 %v3029_v2, %v2863_v13 }
 0x2fa   : > { %v3654_v4 = vpop.f32.mrf.mxu1  ;;  %v2861_v22 = vadd.f32 %v2786_v3, %v2692_v17 }
 0x2fb   : > { %v2788_v7 = vpop.f32.mrf.mxu0 }
 0x2fc   : > { %v2862_v26 = vadd.f32 %v2788_v7, %v2693_v21 }
 0x2fd   : > { %v2958_v10 = vpop.f32.mrf.mxu0 }
 0x2fe   : > { %v3033_v27 = vadd.f32 %v2958_v10, %v2861_v22 }
 0x2ff   : > { %v2960_v14 = vpop.f32.mrf.mxu0  ;;  %v3202_v15 = vpop.f32.mrf.mxu1 }
 0x300   : > { %v3208_v23 = vadd.f32 %v3202_v15, %v3035_v18  ;;  %v3034_v31 = vadd.f32 %v2960_v14, %v2862_v26 }
 0x301   : > { %v3131_v19 = vpop.f32.mrf.mxu0  ;;  %v3659_v20 = vpop.f32.mrf.mxu1 }
 0x302   : > { %v3206_v32 = vadd.f32 %v3131_v19, %v3033_v27 }
 0x303   : > { %v3133_v29 = vpop.f32.mrf.mxu0 }
 0x304   : > { %v3374_v24 = vpop.f32.mrf.mxu1  ;;  %v3207_v35 = vadd.f32 %v3133_v29, %v3034_v31 }
 0x305   : > { %v3380_v28 = vadd.f32 %v3374_v24, %v3208_v23 }
 0x306   : > { %v3664_v30 = vpop.f32.mrf.mxu1 }
 0x307   : > { %v3389_v33 = vadd.f32 %v3385_v25, %v3380_v28 }
 0x308   : > { %v3303_v34 = vpop.f32.mrf.mxu0 }
 0x309   : > { %v3392_v36 = vmax.f32 %v3389_v33, 0.0  ;;  %v3378_v37 = vadd.f32 %v3303_v34, %v3206_v32 }
 0x30a   : > { %v3305_v38 = vpop.f32.mrf.mxu0 }
 0x30b   : > { %v3395_v39 = vmul.f32 0.5, %v3392_v36  ;;  %v3387_v40 = vadd.f32 %v3385_v25, %v3378_v37  ;;  %v3379_v41 = vadd.f32 %v3305_v38, %v3207_v35 }
 0x30d   : > { %v3390_v42 = vmax.f32 %v3387_v40, 0.0  ;;  %v3388_v43 = vadd.f32 %v3385_v25, %v3379_v41  ;;  %3402 = vst.msk [vmem:[%s244_s15 + $0x8] sm:$0xf] %vm3401_vm1, %v3395_v39 }
 0x30f   : > { %v3391_v44 = vmax.f32 %v3388_v43, 0.0  ;;  %v3393_v45 = vmul.f32 0.5, %v3390_v42 }
 0x311   : > { %v3394_v46 = vmul.f32 0.5, %v3391_v44 }
 0x313   : > { %v3398_v0 = vcombine.low %v3393_v45, %v3394_v46 }
 0x315   : > { %3400 = vst [vmem:[%s244_s15] sm:$0xff] %v3398_v0 }
 0x316   : > { %3741 = shalt.err (!%p3738_p3)
}
 0x317   : > { %s3742_s11 = scalar_lea.hbm %s3416_s28, 192  ;;  %s3746_s17 = scalar_lea.hbm %s4266_s6, 384 }
 0x318   : > { %p3743_p4 = scmp.ne.s32.totalorder %s3416_s28, %s3742_s11  ;;  %p3747_p9 = scmp.lt.s32.totalorder %s3416_s28, %s4266_s6 }
 0x319   : > { %p3748_p10 = scmp.lt.s32.totalorder %s3746_s17, %s3742_s11 }
 0x31a   : > { %p3744_p7 = pnand %p3743_p4, %p3880_p5 }
 0x31b   : > { %p3749_p11 = por %p3748_p10, %p3747_p9 }
 0x31c   : > { %p3745_p8 = pneg %p3744_p7 }
 0x31e   : > { %p3750_p12 = pnand %p3749_p11, %p3745_p8 }
 0x320   : > { %3753 = shalt.err (!%p3750_p12)
}
 0x321   : > { %3667 = dma.vmem_to_hbm [thread:$0]  (%p3880_p5), %s3419_s19, 192, %s3416_s28, %s3404_s29  }
 0x322 PF: > { %p3673_p13 = scmp.ge.s32.totalorder %s3788_s24, 2  ;;  %s3430_s18 = sand.u32 1, %s3776_s21  }
 0x323   : > { %s3431_s20 = scalar_lea.sflag [#allocation4], %s3430_s18 }
 0x324   : > { %p3670_p0 = pnand %p3673_p13, %p3884_p6 }
 0x326   : > { %p3671_p1 = pneg %p3670_p0 }
 0x328   : > { %3771 = dma.done.wait (%p3671_p1), %s3431_s20, 192  }
 0x329   : > { %3773 = vsyncadd (%p3671_p1), %s3431_s20, 4294967104  ;;  %p16_p2 = scmp.ge.s32.totalorder %s3867_s27, 4   ;;  %s4269_s21 = smov %s3780_s22 }
 0x32a   : > { %s4270_s22 = smov %s3784_s23  ;;  %s4271_s23 = smov %s3878_s30 }
 0x32b   : > { %s4272_s24 = smov %s3867_s27  ;;  %18 = sbr.rel (!%p16_p2) target bundleno = 3 (0x3), region = 95 }
 0x330   :  { %3436 = vsyncpa [#allocation4], 1 }
 0x331   :  { %3438 = vsyncpa [#allocation4 + $0x1], 1 }

</bundles_post_ra>
